<compile_context>
chip_gen: v7x
topology: tpu7x:2x2x1
jax: 0.10.0
libtpu: 0.0.40
codegen_flags: <defaults>
</compile_context>

<pallas_src>
import jax
import jax.numpy as jnp
from jax.experimental import pallas as pl
from jax.experimental.pallas import tpu as pltpu

EMBEDDING_SIZE = 50

# Total table rows (users + movies) that stay on the fused in-kernel-gather path.
# Sized by the one-hot *compute* (rows x N VPU compares), not VMEM: the one-hot is
# built in _ROW_CHUNK-row chunks, bounding its VMEM footprint to
# _ROW_CHUNK * block_n * 4 B (~4 MiB) on every chip generation.
_FUSED_MAX_TABLE_ROWS = 2048
_ROW_CHUNK = 256

# Raises v5e's 16 MiB scoped default; equal to / below the v6e & v7x defaults.
_VMEM_LIMIT_BYTES = 32 * 1024 * 1024


def _round_up(x, m):
    return ((x + m - 1) // m) * m


def _pick_block_n(n, target, align):
    """Pick the batch tile: as large as `target` (amortizes the ~0.35 us per-step
    grid overhead), but capped so the batch axis gets >= 2 grid blocks whenever
    there is enough work -- that lets the "parallel" grid axis shard across v7x's
    two TensorCores (no effect on single-TC v5e/v6e)."""
    n_eff = max(n, 1)
    bn = min(target, _round_up(n_eff, align))
    if n_eff >= 2 * align:
        bn = min(bn, _round_up((n_eff + 1) // 2, align))
    return max(bn, align)


# ----------------------------------------------------------------------------
# Fused kernel: in-kernel gather (row-chunked one-hot matmul) + mul + reduce + bias.
# Transposed layout: batch runs along lanes, embedding dim along sublanes.
# ----------------------------------------------------------------------------
def _ncf_fused_kernel(u_idx_ref, m_idx_ref, utabT_ref, mtabT_ref, b_ref, o_ref):
    """u_idx/m_idx: (1, BN) i32 (lane-dense); utabT: (E, U) f32 pre-scaled by out_w;
    mtabT: (E, M) f32; b: (1, 1) f32 in SMEM; o: (1, BN) f32.

    logit[n] = sum_e (u[n,e]*w[e]) * m[n,e] + b. The only HBM traffic per block is
    the two int32 id rows and the (1, BN) logit row; the tables stay VMEM-resident.
    """
    bn = o_ref.shape[1]

    def gather_t(tab_ref, idx):
        # Row-chunked one-hot gather: each chunk builds a (chunk, BN) selector on
        # the VPU and gathers rows via a small MXU matmul, keeping the transient
        # bounded (important once the table cap / BN are large, esp. on v7x VMEM).
        # Intermediates larger than the vreg file simply stream through VMEM.
        n_rows = tab_ref.shape[1]
        acc = None
        for start in range(0, n_rows, _ROW_CHUNK):
            size = min(_ROW_CHUNK, n_rows - start)
            rows = jax.lax.broadcasted_iota(jnp.int32, (size, bn), 0) + start
            onehot = (rows == idx).astype(jnp.float32)                # (size, BN)
            part = jnp.dot(tab_ref[:, start:start + size], onehot,    # (E, BN)
                           preferred_element_type=jnp.float32)
            acc = part if acc is None else acc + part
        return acc

    u_idx = u_idx_ref[...]                                            # (1, BN) i32
    m_idx = m_idx_ref[...]                                            # (1, BN) i32
    u_embT = gather_t(utabT_ref, u_idx)        # (E, BN), already scaled by out_w
    m_embT = gather_t(mtabT_ref, m_idx)        # (E, BN)

    # VPU multiply + sublane (XLU) reduction; bias is an SMEM scalar.
    logit = jnp.sum(u_embT * m_embT, axis=0, keepdims=True) + b_ref[0, 0]
    o_ref[...] = logit.astype(o_ref.dtype)


def ncf_forward_fused(user_ids, movie_ids, user_table, movie_table, out_w, out_b,
                      *, block_n=4096):
    """user_ids/movie_ids: (N,) int; tables: (U, E)/(M, E) f32; out_w: (1, E);
    out_b: (1,). Returns (N, 1) f32."""
    n = user_ids.shape[0]
    e = user_table.shape[1]

    bn = _pick_block_n(n, block_n, 128)
    n_pad = _round_up(max(n, 1), bn)

    u_idx = jnp.pad(user_ids.astype(jnp.int32), (0, n_pad - n)).reshape(1, n_pad)
    m_idx = jnp.pad(movie_ids.astype(jnp.int32), (0, n_pad - n)).reshape(1, n_pad)

    # Fold the output weight into the user table ONCE (O(U*E), done on the tiny
    # table -- not a per-batch prescale): drops one resident kernel input and one
    # full (E, BN) VPU multiply per block.
    w_row = out_w.astype(jnp.float32).reshape(1, e)
    utab_wt = (user_table.astype(jnp.float32) * w_row).T              # (E, U)
    mtab_t = movie_table.astype(jnp.float32).T                        # (E, M)
    b_2d = out_b.astype(jnp.float32).reshape(1, 1)                    # (1, 1) -> SMEM

    out = pl.pallas_call(
        _ncf_fused_kernel,
        out_shape=jax.ShapeDtypeStruct((1, n_pad), jnp.float32),
        grid_spec=pltpu.PrefetchScalarGridSpec(
            num_scalar_prefetch=0,
            grid=(n_pad // bn,),
            in_specs=[
                pl.BlockSpec((1, bn), lambda i: (0, i)),          # user ids (lane-dense)
                pl.BlockSpec((1, bn), lambda i: (0, i)),          # movie ids (lane-dense)
                # Resident tables: constant block index -> never re-DMA'd after
                # step 0; small enough (<~0.5 MiB each at the cap) that default
                # double-buffering is negligible VMEM overhead.
                pl.BlockSpec(utab_wt.shape, lambda i: (0, 0)),
                pl.BlockSpec(mtab_t.shape, lambda i: (0, 0)),
                pl.BlockSpec(memory_space=pltpu.MemorySpace.SMEM),  # bias scalar
            ],
            out_specs=pl.BlockSpec((1, bn), lambda i: (0, i)),
        ),
        compiler_params=pltpu.CompilerParams(
            # "parallel" is the portable megacore mechanism: shards the batch axis
            # across v7x's 2 TensorCores, no-op on v5e/v6e.
            dimension_semantics=("parallel",),
            vmem_limit_bytes=_VMEM_LIMIT_BYTES),
    )(u_idx, m_idx, utab_wt, mtab_t, b_2d)
    # Padded lanes gathered row 0 -> garbage logits there; sliced off here.
    return out[0, :n].reshape(n, 1)


# ----------------------------------------------------------------------------
# Fallback kernel for huge embedding tables: gather done in JAX, kernel does the
# elementwise multiply + weighted lane reduction + bias over large batch tiles.
# ----------------------------------------------------------------------------
def _ncf_head_kernel(u_ref, m_ref, w_ref, b_ref, o_ref):
    """u/m: (BN, E); w: (1, E); b: (1, 1) SMEM; o: (BN, 1)."""
    prod = u_ref[...] * m_ref[...] * w_ref[...]                   # (BN, E)  VPU
    o_ref[...] = (jnp.sum(prod, axis=-1, keepdims=True)           # (BN, 1)  XLU reduce
                  + b_ref[0, 0]).astype(o_ref.dtype)


def ncf_head(u_emb, m_emb, out_w, out_b, *, block_n=8192):
    """u_emb, m_emb: (N, E) f32; out_w: (1, E); out_b: (1,). Returns (N, 1) f32."""
    n, e = u_emb.shape
    bn = _pick_block_n(n, block_n, 8)
    n_pad = _round_up(max(n, 1), bn)
    if n_pad != n:
        pad = ((0, n_pad - n), (0, 0))
        u_emb = jnp.pad(u_emb, pad)
        m_emb = jnp.pad(m_emb, pad)
    w_row = out_w.astype(jnp.float32).reshape(1, e)
    b_2d = out_b.astype(jnp.float32).reshape(1, 1)

    # TODO(synk): fuse the embedding gather into this kernel (scalar-prefetched ids
    #   + DMA gather / in-kernel take from HBM or VMEM-resident tables) to avoid XLA
    #   materializing two (N, E) gather results in HBM -- the dominant extra traffic
    #   on this huge-table path.
    # TODO(synk): the (BN, 1) output is lane-sparse (masked stores). Its HBM bytes
    #   are ~1% of the (BN, E) input traffic so it is second-order here, but a
    #   transposed lane-dense (1, BN) output (as the fused path uses) would remove
    #   the masked-store bundles and the 128x lane padding of the output buffer.
    out = pl.pallas_call(
        _ncf_head_kernel,
        out_shape=jax.ShapeDtypeStruct((n_pad, 1), jnp.float32),
        grid_spec=pltpu.PrefetchScalarGridSpec(
            num_scalar_prefetch=0,
            grid=(n_pad // bn,),
            in_specs=[
                pl.BlockSpec((bn, e), lambda i: (i, 0)),           # user embedding tile
                pl.BlockSpec((bn, e), lambda i: (i, 0)),           # movie embedding tile
                pl.BlockSpec((1, e), lambda i: (0, 0)),            # output weight (resident)
                pl.BlockSpec(memory_space=pltpu.MemorySpace.SMEM), # bias scalar
            ],
            out_specs=pl.BlockSpec((bn, 1), lambda i: (i, 0)),
        ),
        compiler_params=pltpu.CompilerParams(
            dimension_semantics=("parallel",),
            vmem_limit_bytes=_VMEM_LIMIT_BYTES),
    )(u_emb, m_emb, w_row, b_2d)
    return out[:n]


# ----------------------------------------------------------------------------
# Parameters / forward wrappers
# ----------------------------------------------------------------------------
def init_params(key, num_users, num_clusters, embedding_size=EMBEDDING_SIZE):
    """Deterministic parameter init matching the PyTorch module's shapes."""
    k_ue, k_me, k_fw, k_fb, k_ow, k_ob = jax.random.split(key, 6)
    # nn.Embedding default init: N(0, 1)
    user_embedding = jax.random.normal(k_ue, (num_users, embedding_size), jnp.float32)
    movie_embedding = jax.random.normal(k_me, (num_clusters, embedding_size), jnp.float32)
    # nn.Linear default init: U(-1/sqrt(fan_in), 1/sqrt(fan_in))
    lim_fc = 1.0 / jnp.sqrt(jnp.float32(embedding_size))
    fc_w = jax.random.uniform(k_fw, (embedding_size, embedding_size), jnp.float32,
                              -lim_fc, lim_fc)     # fc_layers[0]: present in __init__,
    fc_b = jax.random.uniform(k_fb, (embedding_size,), jnp.float32,
                              -lim_fc, lim_fc)     # but UNUSED in forward (matches PyTorch)
    lim_out = 1.0 / jnp.sqrt(jnp.float32(embedding_size))
    out_w = jax.random.uniform(k_ow, (1, embedding_size), jnp.float32, -lim_out, lim_out)
    out_b = jax.random.uniform(k_ob, (1,), jnp.float32, -lim_out, lim_out)
    return {
        "user_embedding": user_embedding,
        "movie_embedding": movie_embedding,
        "fc0_w": fc_w, "fc0_b": fc_b,          # unused in forward
        "out_w": out_w, "out_b": out_b,
    }


def model_forward(params, train_data):
    """train_data: (N, 2) int, columns = (user_id, cluster_id). Returns (N, 1) f32."""
    users = train_data[:, 0].astype(jnp.int32)
    movies = train_data[:, 1].astype(jnp.int32)
    user_tab = params["user_embedding"]
    movie_tab = params["movie_embedding"]
    out_w = params["out_w"]
    out_b = params["out_b"]
    if user_tab.shape[0] + movie_tab.shape[0] <= _FUSED_MAX_TABLE_ROWS:
        # Small/medium tables: keep them VMEM-resident, gather inside the kernel.
        return ncf_forward_fused(users, movies, user_tab, movie_tab, out_w, out_b)
    # Huge tables: plain-JAX gather (HBM), then large-tile multiply+reduce kernel.
    u_emb = user_tab[users]
    m_emb = movie_tab[movies]
    return ncf_head(u_emb, m_emb, out_w, out_b)


def model_forward_ref(params, train_data):
    """Pure-JAX reference of the PyTorch forward, for verification."""
    users = train_data[:, 0]
    movies = train_data[:, 1]
    u_emb = params["user_embedding"][users]
    m_emb = params["movie_embedding"][movies]
    prod = u_emb * m_emb
    return prod @ params["out_w"].T + params["out_b"]


if __name__ == "__main__":
    key = jax.random.PRNGKey(0)
    k_params, k_u, k_m, k_params_b, k_u_b, k_m_b = jax.random.split(key, 6)

    # --- Config A: small tables / small batch (matches the spec's scale). ---
    num_users, num_clusters, batch = 10, 6, 16
    params = init_params(k_params, num_users, num_clusters)
    users = jax.random.randint(k_u, (batch,), 0, num_users, dtype=jnp.int32)
    movies = jax.random.randint(k_m, (batch,), 0, num_clusters, dtype=jnp.int32)
    train_data = jnp.stack([users, movies], axis=1)          # (N, 2) int32

    ref = jax.block_until_ready(model_forward_ref(params, train_data))
    logit = jax.block_until_ready(model_forward(params, train_data))
    assert logit.shape == (batch, 1) and logit.dtype == jnp.float32
    assert jnp.allclose(logit, ref, atol=1e-5, rtol=1e-5), "fused kernel mismatch (A)"

    # --- Config B: exercises the row-chunked one-hot (> _ROW_CHUNK user rows) and a
    # multi-block batch grid (>= 2 blocks -> shardable across v7x's two TCs). ---
    num_users_b, num_clusters_b, batch_b = 300, 40, 640
    params_b = init_params(k_params_b, num_users_b, num_clusters_b)
    users_b = jax.random.randint(k_u_b, (batch_b,), 0, num_users_b, dtype=jnp.int32)
    movies_b = jax.random.randint(k_m_b, (batch_b,), 0, num_clusters_b, dtype=jnp.int32)
    train_data_b = jnp.stack([users_b, movies_b], axis=1)

    ref_b = jax.block_until_ready(model_forward_ref(params_b, train_data_b))
    logit_b = jax.block_until_ready(model_forward(params_b, train_data_b))
    assert logit_b.shape == (batch_b, 1)
    assert jnp.allclose(logit_b, ref_b, atol=1e-5, rtol=1e-5), "fused kernel mismatch (B)"

    # --- Fallback path (huge-table configuration): gather in JAX, Pallas head. ---
    u_emb = params["user_embedding"][users]
    m_emb = params["movie_embedding"][movies]
    logit_fb = jax.block_until_ready(
        ncf_head(u_emb, m_emb, params["out_w"], params["out_b"]))
    assert logit_fb.shape == (batch, 1)
    assert jnp.allclose(logit_fb, ref, atol=1e-5, rtol=1e-5), "fallback kernel mismatch"

    print("KERNEL_OK")
</pallas_src>

<mosaic_0001>
module attributes {stable_mosaic.version = 11 : i64} {
  func.func @_ncf_fused_kernel(%arg0: i32, %arg1: memref<1x128xi32, #tpu.memory_space<vmem>>, %arg2: memref<1x128xi32, #tpu.memory_space<vmem>>, %arg3: memref<50x10xf32, #tpu.memory_space<vmem>>, %arg4: memref<50x6xf32, #tpu.memory_space<vmem>>, %arg5: memref<1x1xf32, #tpu.memory_space<smem>>, %arg6: memref<1x128xf32, #tpu.memory_space<vmem>>) attributes {dimension_semantics = [#tpu.dimension_semantics<parallel>], iteration_bounds = array<i64: 1>, scalar_prefetch = 0 : i64, scratch_operands = 0 : i64, tpu.core_type = #tpu.core_type<tc>, window_params = [{transform_indices = @transform_0, window_bounds = array<i64: 1, 128>}, {transform_indices = @transform_1, window_bounds = array<i64: 1, 128>}, {pipeline_mode = #tpu.pipeline_mode<synchronous>, transform_indices = @transform_2, window_bounds = array<i64: 50, 10>}, {pipeline_mode = #tpu.pipeline_mode<synchronous>, transform_indices = @transform_3, window_bounds = array<i64: 50, 6>}, {transform_indices = @transform_4, window_bounds = array<i64: 1, 1>}, {transform_indices = @transform_5, window_bounds = array<i64: 1, 128>}]} {
    %c0 = arith.constant 0 : index
    %c0_0 = arith.constant 0 : index
    %0 = vector.load %arg1[%c0, %c0_0] : memref<1x128xi32, #tpu.memory_space<vmem>>, vector<1x128xi32>
    %c0_1 = arith.constant 0 : index
    %c0_2 = arith.constant 0 : index
    %1 = vector.load %arg2[%c0_1, %c0_2] : memref<1x128xi32, #tpu.memory_space<vmem>>, vector<1x128xi32>
    %2 = tpu.iota {dimensions = array<i32: 0>} : vector<10x128xi32>
    %c0_i32 = arith.constant 0 : i32
    %3 = vector.broadcast %c0_i32 : i32 to vector<10x128xi32>
    %4 = arith.addi %2, %3 : vector<10x128xi32>
    %5 = vector.broadcast %0 : vector<1x128xi32> to vector<10x128xi32>
    %6 = arith.cmpi eq, %4, %5 : vector<10x128xi32>
    %7 = arith.extui %6 : vector<10x128xi1> to vector<10x128xi32>
    %8 = arith.sitofp %7 : vector<10x128xi32> to vector<10x128xf32>
    %c0_3 = arith.constant 0 : index
    %c0_4 = arith.constant 0 : index
    %9 = vector.load %arg3[%c0_3, %c0_4] : memref<50x10xf32, #tpu.memory_space<vmem>>, vector<50x10xf32>
    %cst = arith.constant dense<0.000000e+00> : vector<50x128xf32>
    %10 = tpu.matmul %9, %8, %cst {dimension_numbers = #tpu.dot_dimension_numbers<[1], [0], [0], [1], [0, 0, 1, 1], [], []>} : vector<50x10xf32>, vector<10x128xf32>, vector<50x128xf32> -> vector<50x128xf32>
    %11 = tpu.iota {dimensions = array<i32: 0>} : vector<6x128xi32>
    %c0_i32_5 = arith.constant 0 : i32
    %12 = vector.broadcast %c0_i32_5 : i32 to vector<6x128xi32>
    %13 = arith.addi %11, %12 : vector<6x128xi32>
    %14 = vector.broadcast %1 : vector<1x128xi32> to vector<6x128xi32>
    %15 = arith.cmpi eq, %13, %14 : vector<6x128xi32>
    %16 = arith.extui %15 : vector<6x128xi1> to vector<6x128xi32>
    %17 = arith.sitofp %16 : vector<6x128xi32> to vector<6x128xf32>
    %c0_6 = arith.constant 0 : index
    %c0_7 = arith.constant 0 : index
    %18 = vector.load %arg4[%c0_6, %c0_7] : memref<50x6xf32, #tpu.memory_space<vmem>>, vector<50x6xf32>
    %cst_8 = arith.constant dense<0.000000e+00> : vector<50x128xf32>
    %19 = tpu.matmul %18, %17, %cst_8 {dimension_numbers = #tpu.dot_dimension_numbers<[1], [0], [0], [1], [0, 0, 1, 1], [], []>} : vector<50x6xf32>, vector<6x128xf32>, vector<50x128xf32> -> vector<50x128xf32>
    %20 = arith.mulf %10, %19 : vector<50x128xf32>
    %cst_9 = arith.constant dense<0.000000e+00> : vector<128xf32>
    %21 = vector.multi_reduction <add>, %20, %cst_9 [0] : vector<50x128xf32> to vector<128xf32>
    %22 = vector.shape_cast %21 : vector<128xf32> to vector<1x128xf32>
    %c0_10 = arith.constant 0 : index
    %c0_11 = arith.constant 0 : index
    %23 = memref.load %arg5[%c0_10, %c0_11] : memref<1x1xf32, #tpu.memory_space<smem>>
    %24 = vector.broadcast %23 : f32 to vector<1x128xf32>
    %25 = arith.addf %22, %24 : vector<1x128xf32>
    %c0_12 = arith.constant 0 : index
    %c0_13 = arith.constant 0 : index
    %26 = vector.load %arg6[%c0_12, %c0_13] : memref<1x128xf32, #tpu.memory_space<vmem>>, vector<1x128xf32>
    tpu.vector_store %arg6[%c0_12, %c0_13], %25 {strides = array<i32>} : memref<1x128xf32, #tpu.memory_space<vmem>>, vector<1x128xf32>,
    return
  }
  func.func @transform_0(%arg0: i32) -> (i32, i32) {
    %c0_i32 = arith.constant 0 : i32
    %c0_i32_0 = arith.constant 0 : i32
    return %c0_i32, %arg0 : i32, i32
  }
  func.func @transform_1(%arg0: i32) -> (i32, i32) {
    %c0_i32 = arith.constant 0 : i32
    %c0_i32_0 = arith.constant 0 : i32
    return %c0_i32, %arg0 : i32, i32
  }
  func.func @transform_2(%arg0: i32) -> (i32, i32) {
    %c0_i32 = arith.constant 0 : i32
    %c0_i32_0 = arith.constant 0 : i32
    %c0_i32_1 = arith.constant 0 : i32
    return %c0_i32, %c0_i32_0 : i32, i32
  }
  func.func @transform_3(%arg0: i32) -> (i32, i32) {
    %c0_i32 = arith.constant 0 : i32
    %c0_i32_0 = arith.constant 0 : i32
    %c0_i32_1 = arith.constant 0 : i32
    return %c0_i32, %c0_i32_0 : i32, i32
  }
  func.func @transform_4(%arg0: i32) -> (i32, i32) {
    %c0_i32 = arith.constant 0 : i32
    %c0_i32_0 = arith.constant 0 : i32
    %c0_i32_1 = arith.constant 0 : i32
    return %c0_i32, %c0_i32_0 : i32, i32
  }
  func.func @transform_5(%arg0: i32) -> (i32, i32) {
    %c0_i32 = arith.constant 0 : i32
    %c0_i32_0 = arith.constant 0 : i32
    return %c0_i32, %arg0 : i32, i32
  }
}

</mosaic_0001>

<bundles_post_ra>
// kernel: tpu_custom_call.1
= control target key start
LH: loop header
LB: loop body
LE: loop exit
PB: predicated region body
PF: predicated region fallthrough
CT: control target
= control target key end

     0   :  { %v24_v0 = vlaneseq  ;;  %v468_v1 = vmov 0.0|0.0   ;;  %v469_v2 = vmov 0.0   ;;  %vm470_vm0 = vmmov 0   ;;  %s596_s0 = inlined_call_operand.vmem [shape: s32[1,128], index: 0, kind: input, shape index: {}]   ;;  %s597_s1 = inlined_call_operand.vmem [shape: s32[1,128], index: 1, kind: input, shape index: {}]   ;;  %s598_s2 = inlined_call_operand.vmem [shape: f32[50,10], index: 2, kind: input, shape index: {}]   ;;  %s599_s3 = inlined_call_operand.vmem [shape: f32[50,6], index: 3, kind: input, shape index: {}]   ;;  %s600_s4 = inlined_call_operand.<no memory space> [shape: f32[1,1], index: 4, kind: input, shape index: {}]   ;;  %s601_s5 = inlined_call_operand.hbm [shape: f32[1,128], index: 5, kind: output, shape index: {}]  }
   0x1   :  { %435 = vmatprep.subr.bf16.mxu0 %v468_v1  ;;  %412 = vmatprep.subr.mxu1 %v469_v2  ;;  %v360_v3 = vld [vmem:[%s597_s1] ss:$0 sm:$0xff]  ;;  %vm66_vm1 = vcmask 1041408   ;;  %vm206_vm2 = vcmask 1045504   ;;  %vm184_vm5 = vcmask 48128  }
   0x2   :  { %v25_v4 = vshrl.u32 %v24_v0, 7  ;;  %414 = vmatprep.mubr.msk.f32.mxu1 %vm470_vm0, %v469_v2  ;;  %391 = vmatprep.mubr.msk.f32.mxu0 %vm470_vm0, %v469_v2  ;;  %v348_v5 = vld [vmem:[%s596_s0] ss:$0 sm:$0xff] }
   0x3   :  { %v177_v7 = vld [vmem:[%s599_s3] sm:$0xff] }
   0x4   :  { %v26_v6 = vadd.s32 8, %v25_v4  ;;  %vm31_vm3 = vcmp.eq.s32.totalorder %v25_v4, %v348_v5  ;;  %vm174_vm4 = vcmp.eq.s32.totalorder %v25_v4, %v360_v3 }
   0x5   :  { %v361_v8 = vsel %vm174_vm4, 1.0, %v469_v2 }
   0x6   :  { %vm32_vm6 = vcmp.eq.s32.totalorder %v26_v6, %v348_v5  ;;  %413 = vmatpush3.msk.msra.mxu1 %vm206_vm2, %v361_v8 }
   0x7   :  { %11 = vsyncpa [#allocation4], 0  ;;  %v350_v9 = vsel %vm32_vm6, 1.0, %v469_v2  ;;  %415 = vmatmul.mubr.msk.f32.vlgmr.msra.gmra.mrb[0].mxu1 %vm184_vm5, %v177_v7  ;;  %v471_v10 = vmov 1.0   ;;  %v178_v12 = vld [vmem:[%s599_s3 + $0x8] sm:$0xff]  ;;  %v37_v13 = vld [vmem:[%s598_s2] sm:$0xff]  ;;  %v331_v8 = vstv %s600_s4 }
   0x8   :  { %vm437_vm7 = vmpackc.low %vm66_vm1, %vm31_vm3  ;;  %v436_v11 = vpack.c.bf16 %v350_v9, %v471_v10  ;;  %417 = vmatprep.mubr.msk.f32.mxu1 %vm470_vm0, %v469_v2  ;;  %vm44_vm8 = vcmask 80896   ;;  %v179_v14 = vld [vmem:[%s599_s3 + $0x10] sm:$0xff]  ;;  %v38_v15 = vld [vmem:[%s598_s2 + $0x8] sm:$0xff]  ;;  %s472_s23 = smov [#allocation3]  }
   0x9   :  { %v180_v16 = vld [vmem:[%s599_s3 + $0x18] sm:$0xff]  ;;  %v39_v17 = vld [vmem:[%s598_s2 + $0x10] sm:$0xff]  ;;  %v181_v18 = vld [vmem:[%s599_s3 + $0x20] sm:$0xff]  ;;  %s340_s0 = sshll.u32 %s472_s23, 4  ;;  %s341_s0 = int_to_ptr.vmem [resolvable:$true] %s340_s0 }
   0xa   :  { %438 = vmatpush3.bf16.msk.msra.mxu0 %vm437_vm7, %v436_v11  ;;  %v40_v19 = vld [vmem:[%s598_s2 + $0x18] sm:$0xff]  ;;  %v182_v20 = vld [vmem:[%s599_s3 + $0x28] sm:$0xff]  ;;  %v41_v21 = vld [vmem:[%s598_s2 + $0x20] sm:$0xff]  ;;  %s444_s1 = scalar_lea.vmem %s341_s0, 16  ;;  %s448_s24 = scalar_lea.vmem %s341_s0, 32 }
   0xb   :  { %418 = vmatmul.mubr.msk.f32.gmra.mrb[2].mxu1 %vm184_vm5, %v178_v12  ;;  %v183_v22 = vld [vmem:[%s599_s3 + $0x30] sm:$0x3]  ;;  %v42_v23 = vld [vmem:[%s598_s2 + $0x28] sm:$0xff]  ;;  %p445_p0 = scmp.ne.s32.totalorder %s341_s0, %s444_s1  ;;  %p449_p1 = scmp.lt.s32.totalorder %s341_s0, %s341_s0 }
   0xc   :  { %420 = vmatprep.mubr.msk.f32.mxu1 %vm470_vm0, %v469_v2  ;;  %v43_v24 = vld [vmem:[%s598_s2 + $0x30] sm:$0x3]  ;;  %p450_p2 = scmp.lt.s32.totalorder %s448_s24, %s444_s1 }
   0xd   :  { %392 = vmatmul.mubr.msk.f32.vlgmr.msra.gmra.mrb[0].mxu0 %vm44_vm8, %v37_v13 }
   0xe   :  { %394 = vmatprep.mubr.msk.f32.mxu0 %vm470_vm0, %v469_v2  ;;  %p451_p3 = por %p450_p2, %p449_p1 }
   0xf   :  { %421 = vmatmul.mubr.msk.f32.gmra.mrb[4].mxu1 %vm184_vm5, %v179_v14 }
  0x10   :  { %423 = vmatprep.mubr.msk.f32.mxu1 %vm470_vm0, %v469_v2  ;;  %p452_p4 = pnand %p451_p3, %p445_p0 }
  0x11   :  { %395 = vmatmul.mubr.msk.f32.gmra.mrb[2].mxu0 %vm44_vm8, %v38_v15 }
  0x12   :  { %397 = vmatprep.mubr.msk.f32.mxu0 %vm470_vm0, %v469_v2 }
  0x13   :  { %424 = vmatmul.mubr.msk.f32.gmra.mrb[6].mxu1 %vm184_vm5, %v180_v16 }
  0x14   :  { %426 = vmatprep.mubr.msk.f32.mxu1 %vm470_vm0, %v469_v2 }
  0x15   :  { %398 = vmatmul.mubr.msk.f32.gmra.mrb[4].mxu0 %vm44_vm8, %v39_v17 }
  0x16   :  { %400 = vmatprep.mubr.msk.f32.mxu0 %vm470_vm0, %v469_v2 }
  0x17   :  { %427 = vmatmul.mubr.msk.f32.gmra.mrb[8].mxu1 %vm184_vm5, %v181_v18 }
  0x18   :  { %429 = vmatprep.mubr.msk.f32.mxu1 %vm470_vm0, %v469_v2 }
  0x19   :  { %401 = vmatmul.mubr.msk.f32.gmra.mrb[6].mxu0 %vm44_vm8, %v40_v19 }
  0x1a   :  { %403 = vmatprep.mubr.msk.f32.mxu0 %vm470_vm0, %v469_v2 }
  0x1b   :  { %430 = vmatmul.mubr.msk.f32.gmra.mrb[10].mxu1 %vm184_vm5, %v182_v20 }
  0x1c   :  { %432 = vmatprep.mubr.msk.f32.mxu1 %vm470_vm0, %v469_v2 }
  0x1d   :  { %404 = vmatmul.mubr.msk.f32.gmra.mrb[8].mxu0 %vm44_vm8, %v41_v21 }
  0x1e   :  { %406 = vmatprep.mubr.msk.f32.mxu0 %vm470_vm0, %v469_v2 }
  0x1f   :  { %433 = vmatmul.mubr.msk.f32.gmra.mrb[12].mxu1 %vm184_vm5, %v183_v22 }
  0x21   :  { %407 = vmatmul.mubr.msk.f32.gmra.mrb[10].mxu0 %vm44_vm8, %v42_v23 }
  0x22   :  { %409 = vmatprep.mubr.msk.f32.mxu0 %vm470_vm0, %v469_v2 }
  0x25   :  { %410 = vmatmul.mubr.msk.f32.gmra.mrb[12].mxu0 %vm44_vm8, %v43_v24 }
  0xda   :  { %v276_v25 = vpop.f32.mrb[0].mxu1 }
  0xdb   :  { %v416_v26 = vpop.f32.mrb[1].mxu1 }
  0xde   :  { %v281_v27 = vpop.f32.mrb[2].mxu1 }
  0xdf   :  { %v419_v28 = vpop.f32.mrb[3].mxu1 }
  0xe0   :  { %v136_v29 = vpop.f32.mrb[0].mxu0 }
  0xe1   :  { %v310_v30 = vmul.f32 %v276_v25, %v136_v29  ;;  %v393_v31 = vpop.f32.mrb[1].mxu0 }
  0xe2   :  { %v286_v32 = vpop.f32.mrb[4].mxu1 }
  0xe3   :  { %v422_v33 = vpop.f32.mrb[5].mxu1 }
  0xe4   :  { %v141_v34 = vpop.f32.mrb[2].mxu0 }
  0xe5   :  { %v311_v35 = vmul.f32 %v281_v27, %v141_v34  ;;  %v396_v36 = vpop.f32.mrb[3].mxu0 }
  0xe6   :  { %v291_v37 = vpop.f32.mrb[6].mxu1 }
  0xe7   :  { %v317_v38 = vadd.f32 %v311_v35, %v310_v30  ;;  %v425_v39 = vpop.f32.mrb[7].mxu1 }
  0xe8   :  { %v146_v40 = vpop.f32.mrb[4].mxu0 }
  0xe9   :  { %v312_v41 = vmul.f32 %v286_v32, %v146_v40  ;;  %v399_v42 = vpop.f32.mrb[5].mxu0 }
  0xea   :  { %v296_v43 = vpop.f32.mrb[8].mxu1 }
  0xeb   :  { %v318_v44 = vadd.f32 %v317_v38, %v312_v41  ;;  %v428_v45 = vpop.f32.mrb[9].mxu1 }
  0xec   :  { %v151_v46 = vpop.f32.mrb[6].mxu0 }
  0xed   :  { %v313_v47 = vmul.f32 %v291_v37, %v151_v46  ;;  %v402_v48 = vpop.f32.mrb[7].mxu0 }
  0xee   :  { %v301_v49 = vpop.f32.mrb[10].mxu1 }
  0xef   :  { %v319_v50 = vadd.f32 %v318_v44, %v313_v47  ;;  %v431_v51 = vpop.f32.mrb[11].mxu1 }
  0xf0   :  { %v156_v52 = vpop.f32.mrb[8].mxu0 }
  0xf1   :  { %v314_v53 = vmul.f32 %v296_v43, %v156_v52  ;;  %v405_v54 = vpop.f32.mrb[9].mxu0 }
  0xf2   :  { %v306_v55 = vpop.f32.mrb[12].mxu1 }
  0xf3   :  { %v320_v56 = vadd.f32 %v319_v50, %v314_v53  ;;  %v434_v57 = vpop.f32.mrb[13].mxu1 }
  0xf4   :  { %v161_v58 = vpop.f32.mrb[10].mxu0 }
  0xf5   :  { %v315_v59 = vmul.f32 %v301_v49, %v161_v58  ;;  %v408_v60 = vpop.f32.mrb[11].mxu0 }
  0xf7   :  { %v321_v61 = vadd.f32 %v320_v56, %v315_v59 }
  0xf8   :  { %v166_v62 = vpop.f32.mrb[12].mxu0 }
  0xf9   :  { %v316_v63 = vmul.f32 %v306_v55, %v166_v62  ;;  %v411_v0 = vpop.f32.mrb[13].mxu0 }
  0xfb   :  { %v322_v1 = vsel %vm66_vm1, %v316_v63, 0.0 }
  0xfc   :  { %v323_v2 = vadd.f32 %v322_v1, %v321_v61 }
  0xfe   :  { %v324_v3 = vrot.slane %v323_v2, 4 }
 0x100   :  { %v325_v4 = vadd.f32 %v324_v3, %v323_v2 }
 0x102   :  { %v326_v5 = vrot.slane %v325_v4, 2 }
 0x104   :  { %v327_v6 = vadd.f32 %v326_v5, %v325_v4 }
 0x106   :  { %v328_v7 = vrot.slane %v327_v6, 1 }
 0x108   :  { %v329_v9 = vadd.f32 %v328_v7, %v327_v6 }
 0x10a   :  { %v332_v10 = vadd.f32 %v331_v8, %v329_v9 }
 0x10c   :  { %333 = vst [vmem:[#allocation3] sm:$0x1] %v332_v10 }
 0x10d   :  { %455 = shalt.err (!%p452_p4)
}
 0x10e   :  { %s456_s27 = scalar_lea.hbm %s601_s5, 16 }
 0x10f   :  { %p457_p5 = scmp.ne.s32.totalorder %s601_s5, %s456_s27  ;;  %p460_p6 = scmp.lt.u32.totalorder %s456_s27, %s601_s5 }
 0x111   :  { %p462_p7 = pnand %p460_p6, %p457_p5 }
 0x113   :  { %465 = shalt.err (!%p462_p7)
}
 0x114   :  { %343 = dma.vmem_to_hbm [thread:$0]  %s341_s0, 16, %s601_s5, [#allocation4]  }
 0x115   :  { %466 = dma.done.wait [#allocation4], 16  }
 0x116   :  { %467 = vsyncadd [#allocation4], 4294967280 }
 0x117   :  { %347 = vsyncpa [#allocation4], 1 }

</bundles_post_ra>
